<compile_context>
chip_gen: v7x
topology: tpu7x:2x2x1
jax: 0.10.0
libtpu: 0.0.40
codegen_flags: <defaults>
</compile_context>

<pallas_src>
import numpy as np

import jax
import jax.numpy as jnp
from jax.experimental import pallas as pl
from jax.experimental.pallas import tpu as pltpu

C = 8          # out_channels from the module's __init__
KH = KW = 3    # kernel size from the module's __init__


def _fused_kernel(x_ref, w_ref, b_ref, o_ref, lhs_ref):
    """Whole forward pass for one block of NB images (lane-packed layout).

    x_ref:   (NB, H, W*C)        input block, bf16
    w_ref:   (KH*W*C, W*C)       fused (kh-stacked) block-banded weights, bf16
    b_ref:   (1, W*C)            bias tiled along w, f32
    o_ref:   (NB, H, W*C)        output block, f32
    lhs_ref: (2*NB*H, KH*W*C)    VMEM scratch for the fused matmul LHS, bf16
    """
    NB, H, WC = x_ref.shape
    R = NB * H

    w_fused = w_ref[...]                    # (3*WC, WC) bf16
    bias = b_ref[...]                       # (1, WC) f32

    # Per-image edge masks, hoisted out of the conv and shared by all three
    # conv applications (rows are h within each image; periodic with period H).
    r = jax.lax.broadcasted_iota(jnp.int32, (R, 1), 0)
    keep_top = ((r % H) != 0).astype(jnp.float32)        # kills in[h-1] at h==0
    keep_bot = ((r % H) != (H - 1)).astype(jnp.float32)  # kills in[h+1] at h==H-1

    def emit_taps(t_f32, row_off):
        """Write [in[h-1] | in[h] | in[h+1]] (edge-masked) for R rows into the
        fused-LHS scratch as bf16.  Rolls run on the XLU; the wrap across image
        (and v1/t3 seam) boundaries is exactly what the masks zero out."""
        down = pltpu.roll(t_f32, shift=1, axis=0) * keep_top         # in[h-1]
        up = pltpu.roll(t_f32, shift=R - 1, axis=0) * keep_bot       # in[h+1]
        lhs_ref[row_off:row_off + R, 0:WC] = down.astype(jnp.bfloat16)
        lhs_ref[row_off:row_off + R, WC:2 * WC] = t_f32.astype(jnp.bfloat16)
        lhs_ref[row_off:row_off + R, 2 * WC:3 * WC] = up.astype(jnp.bfloat16)

    def conv_from_scratch(rows):
        """One fused MXU matmul: all three kh taps accumulate inside the MXU."""
        return jnp.dot(lhs_ref[0:rows, :], w_fused,
                       preferred_element_type=jnp.float32) + bias

    # ---- conv #1 on the input block -------------------------------------
    x2 = x_ref[...].reshape(R, WC).astype(jnp.float32)   # exact bf16 values
    emit_taps(x2, 0)
    v1 = conv_from_scratch(R)               # (R, WC) f32

    # ---- the module's forward (v6 is computed-but-unused in the original) --
    v2 = v1 * 0.5
    v4 = v1 * 0.7071067811865476
    v5 = v1 * 0.044715
    t3 = v1 * v5 * v4
    # v6 = v3 * 0.7978845608028654     # dead value in the original forward

    # conv #2 (input v1) and conv #3 (input v1*v5*v4) share weights and are
    # independent -> stack along M inside the scratch, one MXU matmul.
    emit_taps(v1, 0)
    emit_taps(t3, R)
    cs = conv_from_scratch(2 * R)           # (2R, WC) f32
    c2 = cs[0:R]
    c3 = cs[R:2 * R]

    v3 = jnp.maximum(v2 + c2, 0.0)          # ReLU
    v7 = v3 + c3
    v8 = jnp.tanh(v7)
    v9 = v2 * v8
    # TODO(synk): on v6e/v7x the elementwise tail could run in bf16; kept f32 so
    # the same kernel is also right for v5e (no bf16 VPU/EUP) and stays exact.

    o_ref[...] = v9.reshape(NB, H, WC).astype(o_ref.dtype)


def fused_forward(x_packed, w_fused, bias_packed, *, block_n=None):
    """x_packed: (N, H, W*C) bf16, w_fused: (KH*W*C, W*C) bf16, bias: (1, W*C) f32."""
    N, H, WC = x_packed.shape
    assert WC == 128, "lane-packed layout requires W*C == 128"
    if block_n is None:
        # >= 2 grid steps when possible so dimension_semantics=("parallel",)
        # can shard the batch across v7x's two TensorCores; on single-TC
        # v5e/v6e the extra grid step only costs ~0.35us.
        block_n = N // 2 if (N % 2 == 0 and N >= 2) else N
    NB = min(block_n, N)
    assert N % NB == 0
    assert (NB * H) % 8 == 0, "rows per block must be sublane-aligned"
    # TODO(synk): for large H/W/N add an H-tiling grid axis with a 1-row halo,
    # re-derive NB against v7x's 64 MiB VMEM and set vmem_limit_bytes; at these
    # sizes everything fits comfortably in the scoped default.
    return pl.pallas_call(
        _fused_kernel,
        out_shape=jax.ShapeDtypeStruct((N, H, WC), jnp.float32),
        grid_spec=pltpu.PrefetchScalarGridSpec(
            num_scalar_prefetch=0,
            grid=(N // NB,),
            in_specs=[
                pl.BlockSpec((NB, H, WC), lambda n: (n, 0, 0)),
                pl.BlockSpec((KH * WC, WC), lambda n: (0, 0)),
                pl.BlockSpec((1, WC), lambda n: (0, 0)),
            ],
            out_specs=pl.BlockSpec((NB, H, WC), lambda n: (n, 0, 0)),
            scratch_shapes=[pltpu.VMEM((2 * NB * H, KH * WC), jnp.bfloat16)],
        ),
        compiler_params=pltpu.CompilerParams(
            # Batch blocks are independent -> shard across TCs on v7x.
            dimension_semantics=("parallel",),
        ),
    )(x_packed, w_fused, bias_packed)


def build_banded_weights(w_hat, W):
    """Fold the kw taps + channel contraction of a 3x3 'same' conv into per-kh
    block-banded (W*Cin, W*Cout) matrices for the lane-packed (w,c) layout."""
    kh_n, kw_n, cin, cout = w_hat.shape
    wh = np.asarray(w_hat, dtype=np.float32)
    wb = np.zeros((kh_n, W * cin, W * cout), np.float32)
    for kh in range(kh_n):
        for wo in range(W):
            for kw in range(kw_n):
                wi = wo + kw - 1              # input column feeding this tap
                if 0 <= wi < W:
                    wb[kh, wi * cin:(wi + 1) * cin,
                       wo * cout:(wo + 1) * cout] = wh[kh, kw]
    return jnp.asarray(wb)


# ----------------------------- pure-JAX reference -----------------------------
def _conv_ref(t, w_hat_bf16, bias):
    out = jax.lax.conv_general_dilated(
        t.astype(jnp.bfloat16), w_hat_bf16,
        window_strides=(1, 1), padding=((1, 1), (1, 1)),
        dimension_numbers=("NHWC", "HWIO", "NHWC"),
        preferred_element_type=jnp.float32)
    return out + bias.reshape(1, 1, 1, -1)


def _forward_ref(x, w_hat_bf16, bias):
    conv = lambda t: _conv_ref(t, w_hat_bf16, bias)
    v1 = conv(x)
    v2 = v1 * 0.5
    v3 = jax.nn.relu(v2 + conv(v1))
    v4 = v1 * 0.7071067811865476
    v5 = v1 * 0.044715
    v7 = v3 + conv(v1 * v5 * v4)
    v8 = jnp.tanh(v7)
    return v2 * v8


if __name__ == "__main__":
    N, H, W = 2, 16, 16            # W * C == 128 -> exact lane-dense packing

    key = jax.random.PRNGKey(0)
    k_w, k_b, k_x = jax.random.split(key, 3)

    # Deterministic ConvTranspose2d parameters, PyTorch weight layout
    # (in_channels, out_channels, kH, kW) and default uniform(-1/sqrt(fan), +).
    fan = C * KH * KW
    bound = 1.0 / (fan ** 0.5)
    w_pt = jax.random.uniform(k_w, (C, C, KH, KW), jnp.float32, -bound, bound)
    bias = jax.random.uniform(k_b, (C,), jnp.float32, -bound, bound)

    # Rearrange to (kh, kw, Cin, Cout) and flip spatially so that a plain 3x3
    # "same" correlation implements the stride-1 / pad-1 transposed conv.
    w_hat = jnp.transpose(w_pt, (2, 3, 0, 1))[::-1, ::-1]

    x = jax.random.normal(k_x, (N, H, W, C), jnp.float32)   # NHWC

    # Lane-packed operands for the kernel (input DMA'd as bf16: it only feeds
    # the bf16 matmul operands anyway).
    x_packed = x.reshape(N, H, W * C).astype(jnp.bfloat16)
    wb = build_banded_weights(w_hat, W)                           # (3, 128, 128)
    w_fused = wb.reshape(KH * W * C, W * C).astype(jnp.bfloat16)  # kh stacked on K
    bias_packed = jnp.tile(bias, W).reshape(1, W * C)

    out_packed = fused_forward(x_packed, w_fused, bias_packed)
    out = jax.block_until_ready(out_packed).reshape(N, H, W, C)

    # Reference uses the same bf16 conv operands (f32 accumulation), so both
    # paths compute identical products and differ only by summation order.
    ref = jax.block_until_ready(_forward_ref(x, w_hat.astype(jnp.bfloat16), bias))
    assert out.shape == (N, H, W, C)
    err = float(jnp.max(jnp.abs(out - ref)))
    assert jnp.allclose(out, ref, rtol=2e-3, atol=2e-3), err

    print("KERNEL_OK")
</pallas_src>

<mosaic_0001>
module attributes {stable_mosaic.version = 11 : i64} {
  func.func @_fused_kernel(%arg0: i32, %arg1: memref<1x16x128xbf16, #tpu.memory_space<vmem>>, %arg2: memref<384x128xbf16, #tpu.memory_space<vmem>>, %arg3: memref<1x128xf32, #tpu.memory_space<vmem>>, %arg4: memref<1x16x128xf32, #tpu.memory_space<vmem>>, %arg5: memref<32x384xbf16, #tpu.memory_space<vmem>>) attributes {dimension_semantics = [#tpu.dimension_semantics<parallel>], iteration_bounds = array<i64: 2>, scalar_prefetch = 0 : i64, scratch_operands = 1 : i64, tpu.core_type = #tpu.core_type<tc>, window_params = [{transform_indices = @transform_0, window_bounds = array<i64: 1, 16, 128>}, {pipeline_mode = #tpu.pipeline_mode<synchronous>, transform_indices = @transform_1, window_bounds = array<i64: 384, 128>}, {pipeline_mode = #tpu.pipeline_mode<synchronous>, transform_indices = @transform_2, window_bounds = array<i64: 1, 128>}, {transform_indices = @transform_3, window_bounds = array<i64: 1, 16, 128>}]} {
    %c0 = arith.constant 0 : index
    %c0_0 = arith.constant 0 : index
    %0 = vector.load %arg2[%c0, %c0_0] : memref<384x128xbf16, #tpu.memory_space<vmem>>, vector<384x128xbf16>
    %c0_1 = arith.constant 0 : index
    %c0_2 = arith.constant 0 : index
    %1 = vector.load %arg3[%c0_1, %c0_2] : memref<1x128xf32, #tpu.memory_space<vmem>>, vector<1x128xf32>
    %2 = tpu.iota {dimensions = array<i32: 0>} : vector<16x1xi32>
    %c16_i32 = arith.constant 16 : i32
    %c0_i32 = arith.constant 0 : i32
    %3 = arith.cmpi eq, %c16_i32, %c0_i32 : i32
    %c1_i32 = arith.constant 1 : i32
    %4 = arith.select %3, %c1_i32, %c16_i32 : i32
    %5 = vector.broadcast %4 : i32 to vector<16x1xi32>
    %6 = arith.remsi %2, %5 : vector<16x1xi32>
    %c0_i32_3 = arith.constant 0 : i32
    %7 = vector.broadcast %c0_i32_3 : i32 to vector<16x1xi32>
    %8 = arith.cmpi ne, %6, %7 : vector<16x1xi32>
    %c0_i32_4 = arith.constant 0 : i32
    %9 = vector.broadcast %c0_i32_4 : i32 to vector<16x1xi32>
    %10 = arith.cmpi slt, %6, %9 : vector<16x1xi32>
    %c0_i32_5 = arith.constant 0 : i32
    %11 = arith.cmpi slt, %4, %c0_i32_5 : i32
    %12 = vector.broadcast %11 : i1 to vector<16x1xi1>
    %13 = vector.broadcast %12 : vector<16x1xi1> to vector<16x1xi1>
    %14 = arith.xori %10, %13 : vector<16x1xi1>
    %15 = arith.andi %14, %8 : vector<16x1xi1>
    %16 = vector.broadcast %4 : i32 to vector<16x1xi32>
    %17 = arith.addi %6, %16 : vector<16x1xi32>
    %18 = arith.select %15, %17, %6 : vector<16x1xi1>, vector<16x1xi32>
    %c0_i32_6 = arith.constant 0 : i32
    %19 = vector.broadcast %c0_i32_6 : i32 to vector<16x1xi32>
    %20 = arith.cmpi ne, %18, %19 : vector<16x1xi32>
    %21 = arith.extui %20 : vector<16x1xi1> to vector<16x1xi32>
    %22 = arith.sitofp %21 : vector<16x1xi32> to vector<16x1xf32>
    %c16_i32_7 = arith.constant 16 : i32
    %c0_i32_8 = arith.constant 0 : i32
    %23 = arith.cmpi eq, %c16_i32_7, %c0_i32_8 : i32
    %c1_i32_9 = arith.constant 1 : i32
    %24 = arith.select %23, %c1_i32_9, %c16_i32_7 : i32
    %25 = vector.broadcast %24 : i32 to vector<16x1xi32>
    %26 = arith.remsi %2, %25 : vector<16x1xi32>
    %c0_i32_10 = arith.constant 0 : i32
    %27 = vector.broadcast %c0_i32_10 : i32 to vector<16x1xi32>
    %28 = arith.cmpi ne, %26, %27 : vector<16x1xi32>
    %c0_i32_11 = arith.constant 0 : i32
    %29 = vector.broadcast %c0_i32_11 : i32 to vector<16x1xi32>
    %30 = arith.cmpi slt, %26, %29 : vector<16x1xi32>
    %c0_i32_12 = arith.constant 0 : i32
    %31 = arith.cmpi slt, %24, %c0_i32_12 : i32
    %32 = vector.broadcast %31 : i1 to vector<16x1xi1>
    %33 = vector.broadcast %32 : vector<16x1xi1> to vector<16x1xi1>
    %34 = arith.xori %30, %33 : vector<16x1xi1>
    %35 = arith.andi %34, %28 : vector<16x1xi1>
    %36 = vector.broadcast %24 : i32 to vector<16x1xi32>
    %37 = arith.addi %26, %36 : vector<16x1xi32>
    %38 = arith.select %35, %37, %26 : vector<16x1xi1>, vector<16x1xi32>
    %c15_i32 = arith.constant 15 : i32
    %39 = vector.broadcast %c15_i32 : i32 to vector<16x1xi32>
    %40 = arith.cmpi ne, %38, %39 : vector<16x1xi32>
    %41 = arith.extui %40 : vector<16x1xi1> to vector<16x1xi32>
    %42 = arith.sitofp %41 : vector<16x1xi32> to vector<16x1xf32>
    %c0_13 = arith.constant 0 : index
    %c0_14 = arith.constant 0 : index
    %c0_15 = arith.constant 0 : index
    %43 = vector.load %arg1[%c0_13, %c0_14, %c0_15] : memref<1x16x128xbf16, #tpu.memory_space<vmem>>, vector<1x16x128xbf16>
    %44 = vector.shape_cast %43 : vector<1x16x128xbf16> to vector<16x128xbf16>
    %45 = arith.extf %44 : vector<16x128xbf16> to vector<16x128xf32>
    %c1_i32_16 = arith.constant 1 : i32
    %46 = tpu.dynamic_rotate %45 by %c1_i32_16 dim 0 : vector<16x128xf32>, i32 -> vector<16x128xf32>
    %47 = vector.broadcast %22 : vector<16x1xf32> to vector<16x128xf32>
    %48 = arith.mulf %46, %47 : vector<16x128xf32>
    %c15_i32_17 = arith.constant 15 : i32
    %49 = tpu.dynamic_rotate %45 by %c15_i32_17 dim 0 : vector<16x128xf32>, i32 -> vector<16x128xf32>
    %50 = vector.broadcast %42 : vector<16x1xf32> to vector<16x128xf32>
    %51 = arith.mulf %49, %50 : vector<16x128xf32>
    %52 = arith.truncf %48 : vector<16x128xf32> to vector<16x128xbf16>
    %c0_18 = arith.constant 0 : index
    %c0_19 = arith.constant 0 : index
    %53 = vector.load %arg5[%c0_18, %c0_19] : memref<32x384xbf16, #tpu.memory_space<vmem>>, vector<16x128xbf16>
    tpu.vector_store %arg5[%c0_18, %c0_19], %52 {strides = array<i32>} : memref<32x384xbf16, #tpu.memory_space<vmem>>, vector<16x128xbf16>,
    %54 = arith.truncf %45 : vector<16x128xf32> to vector<16x128xbf16>
    %c0_20 = arith.constant 0 : index
    %c128 = arith.constant 128 : index
    %55 = vector.load %arg5[%c0_20, %c128] : memref<32x384xbf16, #tpu.memory_space<vmem>>, vector<16x128xbf16>
    tpu.vector_store %arg5[%c0_20, %c128], %54 {strides = array<i32>} : memref<32x384xbf16, #tpu.memory_space<vmem>>, vector<16x128xbf16>,
    %56 = arith.truncf %51 : vector<16x128xf32> to vector<16x128xbf16>
    %c0_21 = arith.constant 0 : index
    %c256 = arith.constant 256 : index
    %57 = vector.load %arg5[%c0_21, %c256] : memref<32x384xbf16, #tpu.memory_space<vmem>>, vector<16x128xbf16>
    tpu.vector_store %arg5[%c0_21, %c256], %56 {strides = array<i32>} : memref<32x384xbf16, #tpu.memory_space<vmem>>, vector<16x128xbf16>,
    %c0_22 = arith.constant 0 : index
    %c0_23 = arith.constant 0 : index
    %58 = vector.load %arg5[%c0_22, %c0_23] : memref<32x384xbf16, #tpu.memory_space<vmem>>, vector<16x384xbf16>
    %cst = arith.constant dense<0.000000e+00> : vector<16x128xf32>
    %59 = tpu.matmul %58, %0, %cst {dimension_numbers = #tpu.dot_dimension_numbers<[1], [0], [0], [1], [0, 0, 1, 1], [], []>} : vector<16x384xbf16>, vector<384x128xbf16>, vector<16x128xf32> -> vector<16x128xf32>
    %60 = vector.broadcast %1 : vector<1x128xf32> to vector<16x128xf32>
    %61 = arith.addf %59, %60 : vector<16x128xf32>
    %cst_24 = arith.constant 5.000000e-01 : f32
    %62 = vector.broadcast %cst_24 : f32 to vector<16x128xf32>
    %63 = arith.mulf %61, %62 : vector<16x128xf32>
    %cst_25 = arith.constant 0.707106769 : f32
    %64 = vector.broadcast %cst_25 : f32 to vector<16x128xf32>
    %65 = arith.mulf %61, %64 : vector<16x128xf32>
    %cst_26 = arith.constant 4.471500e-02 : f32
    %66 = vector.broadcast %cst_26 : f32 to vector<16x128xf32>
    %67 = arith.mulf %61, %66 : vector<16x128xf32>
    %68 = arith.mulf %61, %67 : vector<16x128xf32>
    %69 = arith.mulf %68, %65 : vector<16x128xf32>
    %c1_i32_27 = arith.constant 1 : i32
    %70 = tpu.dynamic_rotate %61 by %c1_i32_27 dim 0 : vector<16x128xf32>, i32 -> vector<16x128xf32>
    %71 = vector.broadcast %22 : vector<16x1xf32> to vector<16x128xf32>
    %72 = arith.mulf %70, %71 : vector<16x128xf32>
    %c15_i32_28 = arith.constant 15 : i32
    %73 = tpu.dynamic_rotate %61 by %c15_i32_28 dim 0 : vector<16x128xf32>, i32 -> vector<16x128xf32>
    %74 = vector.broadcast %42 : vector<16x1xf32> to vector<16x128xf32>
    %75 = arith.mulf %73, %74 : vector<16x128xf32>
    %76 = arith.truncf %72 : vector<16x128xf32> to vector<16x128xbf16>
    %c0_29 = arith.constant 0 : index
    %c0_30 = arith.constant 0 : index
    %77 = vector.load %arg5[%c0_29, %c0_30] : memref<32x384xbf16, #tpu.memory_space<vmem>>, vector<16x128xbf16>
    tpu.vector_store %arg5[%c0_29, %c0_30], %76 {strides = array<i32>} : memref<32x384xbf16, #tpu.memory_space<vmem>>, vector<16x128xbf16>,
    %78 = arith.truncf %61 : vector<16x128xf32> to vector<16x128xbf16>
    %c0_31 = arith.constant 0 : index
    %c128_32 = arith.constant 128 : index
    %79 = vector.load %arg5[%c0_31, %c128_32] : memref<32x384xbf16, #tpu.memory_space<vmem>>, vector<16x128xbf16>
    tpu.vector_store %arg5[%c0_31, %c128_32], %78 {strides = array<i32>} : memref<32x384xbf16, #tpu.memory_space<vmem>>, vector<16x128xbf16>,
    %80 = arith.truncf %75 : vector<16x128xf32> to vector<16x128xbf16>
    %c0_33 = arith.constant 0 : index
    %c256_34 = arith.constant 256 : index
    %81 = vector.load %arg5[%c0_33, %c256_34] : memref<32x384xbf16, #tpu.memory_space<vmem>>, vector<16x128xbf16>
    tpu.vector_store %arg5[%c0_33, %c256_34], %80 {strides = array<i32>} : memref<32x384xbf16, #tpu.memory_space<vmem>>, vector<16x128xbf16>,
    %c1_i32_35 = arith.constant 1 : i32
    %82 = tpu.dynamic_rotate %69 by %c1_i32_35 dim 0 : vector<16x128xf32>, i32 -> vector<16x128xf32>
    %83 = vector.broadcast %22 : vector<16x1xf32> to vector<16x128xf32>
    %84 = arith.mulf %82, %83 : vector<16x128xf32>
    %c15_i32_36 = arith.constant 15 : i32
    %85 = tpu.dynamic_rotate %69 by %c15_i32_36 dim 0 : vector<16x128xf32>, i32 -> vector<16x128xf32>
    %86 = vector.broadcast %42 : vector<16x1xf32> to vector<16x128xf32>
    %87 = arith.mulf %85, %86 : vector<16x128xf32>
    %88 = arith.truncf %84 : vector<16x128xf32> to vector<16x128xbf16>
    %c16 = arith.constant 16 : index
    %c0_37 = arith.constant 0 : index
    %89 = vector.load %arg5[%c16, %c0_37] : memref<32x384xbf16, #tpu.memory_space<vmem>>, vector<16x128xbf16>
    tpu.vector_store %arg5[%c16, %c0_37], %88 {strides = array<i32>} : memref<32x384xbf16, #tpu.memory_space<vmem>>, vector<16x128xbf16>,
    %90 = arith.truncf %69 : vector<16x128xf32> to vector<16x128xbf16>
    %c16_38 = arith.constant 16 : index
    %c128_39 = arith.constant 128 : index
    %91 = vector.load %arg5[%c16_38, %c128_39] : memref<32x384xbf16, #tpu.memory_space<vmem>>, vector<16x128xbf16>
    tpu.vector_store %arg5[%c16_38, %c128_39], %90 {strides = array<i32>} : memref<32x384xbf16, #tpu.memory_space<vmem>>, vector<16x128xbf16>,
    %92 = arith.truncf %87 : vector<16x128xf32> to vector<16x128xbf16>
    %c16_40 = arith.constant 16 : index
    %c256_41 = arith.constant 256 : index
    %93 = vector.load %arg5[%c16_40, %c256_41] : memref<32x384xbf16, #tpu.memory_space<vmem>>, vector<16x128xbf16>
    tpu.vector_store %arg5[%c16_40, %c256_41], %92 {strides = array<i32>} : memref<32x384xbf16, #tpu.memory_space<vmem>>, vector<16x128xbf16>,
    %c0_42 = arith.constant 0 : index
    %c0_43 = arith.constant 0 : index
    %94 = vector.load %arg5[%c0_42, %c0_43] : memref<32x384xbf16, #tpu.memory_space<vmem>>, vector<32x384xbf16>
    %cst_44 = arith.constant dense<0.000000e+00> : vector<32x128xf32>
    %95 = tpu.matmul %94, %0, %cst_44 {dimension_numbers = #tpu.dot_dimension_numbers<[1], [0], [0], [1], [0, 0, 1, 1], [], []>} : vector<32x384xbf16>, vector<384x128xbf16>, vector<32x128xf32> -> vector<32x128xf32>
    %96 = vector.broadcast %1 : vector<1x128xf32> to vector<32x128xf32>
    %97 = arith.addf %95, %96 : vector<32x128xf32>
    %98 = vector.extract_strided_slice %97 {offsets = [0, 0], sizes = [16, 128], strides = [1, 1]} : vector<32x128xf32> to vector<16x128xf32>
    %99 = vector.extract_strided_slice %97 {offsets = [16, 0], sizes = [16, 128], strides = [1, 1]} : vector<32x128xf32> to vector<16x128xf32>
    %100 = arith.addf %63, %98 : vector<16x128xf32>
    %cst_45 = arith.constant 0.000000e+00 : f32
    %101 = vector.broadcast %cst_45 : f32 to vector<16x128xf32>
    %102 = arith.maximumf %100, %101 : vector<16x128xf32>
    %103 = arith.addf %102, %99 : vector<16x128xf32>
    %104 = math.tanh %103 : vector<16x128xf32>
    %105 = arith.mulf %63, %104 : vector<16x128xf32>
    %106 = vector.shape_cast %105 : vector<16x128xf32> to vector<1x16x128xf32>
    %c0_46 = arith.constant 0 : index
    %c0_47 = arith.constant 0 : index
    %c0_48 = arith.constant 0 : index
    %107 = vector.load %arg4[%c0_46, %c0_47, %c0_48] : memref<1x16x128xf32, #tpu.memory_space<vmem>>, vector<1x16x128xf32>
    tpu.vector_store %arg4[%c0_46, %c0_47, %c0_48], %106 {strides = array<i32>} : memref<1x16x128xf32, #tpu.memory_space<vmem>>, vector<1x16x128xf32>,
    return
  }
  func.func @transform_0(%arg0: i32) -> (i32, i32, i32) {
    %c0_i32 = arith.constant 0 : i32
    %c0_i32_0 = arith.constant 0 : i32
    %c0_i32_1 = arith.constant 0 : i32
    return %arg0, %c0_i32, %c0_i32_0 : i32, i32, i32
  }
  func.func @transform_1(%arg0: i32) -> (i32, i32) {
    %c0_i32 = arith.constant 0 : i32
    %c0_i32_0 = arith.constant 0 : i32
    %c0_i32_1 = arith.constant 0 : i32
    return %c0_i32, %c0_i32_0 : i32, i32
  }
  func.func @transform_2(%arg0: i32) -> (i32, i32) {
    %c0_i32 = arith.constant 0 : i32
    %c0_i32_0 = arith.constant 0 : i32
    %c0_i32_1 = arith.constant 0 : i32
    return %c0_i32, %c0_i32_0 : i32, i32
  }
  func.func @transform_3(%arg0: i32) -> (i32, i32, i32) {
    %c0_i32 = arith.constant 0 : i32
    %c0_i32_0 = arith.constant 0 : i32
    %c0_i32_1 = arith.constant 0 : i32
    return %arg0, %c0_i32, %c0_i32_0 : i32, i32, i32
  }
}

</mosaic_0001>

<bundles_post_ra>
// kernel: tpu_custom_call.1
= control target key start
LH: loop header
LB: loop body
LE: loop exit
PB: predicated region body
PF: predicated region fallthrough
CT: control target
= control target key end

     0   :  { %8 = vsyncpa [#allocation4], 0  ;;  %s1582_s0 = inlined_call_operand.hbm [shape: bf16[2,16,128], index: 0, kind: input, shape index: {}]   ;;  %s1583_s1 = inlined_call_operand.hbm [shape: bf16[384,128], index: 1, kind: input, shape index: {}]   ;;  %s1584_s2 = inlined_call_operand.vmem [shape: f32[1,128], index: 2, kind: input, shape index: {}]   ;;  %s1585_s3 = inlined_call_operand.hbm [shape: f32[2,16,128], index: 3, kind: output, shape index: {}]  }
   0x1   :  { %10 = vsyncpa [#allocation4 + $0x1], 0 }
   0x2   :  { %11 = vsyncpa [#allocation7], 0 }
   0x3   :  { %12 = vsyncpa [#allocation5], 0 }
   0x4   :  { %14 = vsyncpa [#allocation5 + $0x1], 0  ;;  %s1223_s12 = smov 0   ;;  %s1225_s13 = smov 0  }
   0x5   :  { %s1227_s14 = smov 0   ;;  %s1229_s15 = smov 0  }
   0x6 LB: > { %s1244_s16 = sadd.s32 4294967295, %s1192_s15   ;;  %s816_s17 = sadd.s32 4294967294, %s1192_s15   ;;  %s1192_s15 = sphi %s1229_s15, %s1605_s15   ;;  %s1188_s14 = sphi %s1227_s14, %s1604_s14   ;;  %s1184_s13 = sphi %s1225_s13, %s1603_s13   ;;  %s1180_s12 = sphi %s1223_s12, %s1602_s12  }
   0x7   : > { %p40_p0 = scmp.ne.s32.totalorder %s1184_s13, %s1180_s12  ;;  %p1586_p1 = scmp.eq.s32.totalorder %s1244_s16, 0 }
   0x8   : > { %p112_p3 = scmp.eq.s32.totalorder %s816_s17, 1  ;;  %p817_p5 = scmp.ge.s32.totalorder %s1192_s15, 1 }
   0x9   : > { %p1253_p4 = por %p1586_p1, %p40_p0  ;;  %p119_p7 = scmp.lt.s32.totalorder %s1192_s15, 3 }
   0xa   : > { %p1258_p6 = por %p112_p3, %p40_p0  ;;  %s1194_s21 = smov [#allocation6]  }
   0xb   : > { %s1589_s18 = scalar_select %p1253_p4, 1, 0 }
   0xc   : > { %s1590_s19 = scalar_select %p1258_p6, 1, 0 }
   0xd   : > { %p1263_p8 = pnand %p817_p5, %p119_p7  ;;  %s131_s22 = sshll.u32 %s1194_s21, 4  ;;  %s1267_s22 = int_to_ptr.vmem [resolvable:$true] %s131_s22 }
   0xe   : > { %s1279_s24 = sadd.s32 1, %s1192_s15   ;;  %s27_s25 = sadd.s32 1, %s1188_s14 }
   0xf   : > { %s1591_s20 = scalar_select %p1263_p8, 1, 0 }
  0x10   : > { %p979_p9 = pneg %p1263_p8  ;;  %s24_s26 = ssub.s32 %s1192_s15, %s1279_s24 }
  0x11   : > { %s1064_s29 = scalar_lea.hbm %s1583_s1, 3072 }
  0x12   : > { %p1274_p11 = pnand %p979_p9, %p1586_p1  ;;  %p1065_p12 = scmp.ne.s32.totalorder %s1583_s1, %s1064_s29 }
  0x13   : > { %p1071_p5 = scmp.lt.u32.totalorder %s1064_s29, %s1583_s1 }
  0x14   : > { %p1066_p13 = pneg %p1274_p11 }
  0x16   : > { %p1067_p0 = pnand %p1066_p13, %p1065_p12 }
  0x18   : > { %p1068_p3 = pneg %p1067_p0 }
  0x1a   : > { %p1073_p7 = pnand %p1071_p5, %p1068_p3 }
  0x1c   : > { %1076 = shalt.err (!%p1073_p7)
}
  0x1d   : > { %s1077_s7 = scalar_lea.vmem %s1267_s22, 3072  ;;  %p1085_p2 = scmp.lt.s32.totalorder %s1267_s22, %s1267_s22 }
  0x1e   : > { %p1078_p9 = scmp.ne.s32.totalorder %s1267_s22, %s1077_s7  ;;  %p1086_p6 = scmp.lt.s32.totalorder %s1077_s7, %s1077_s7 }
  0x20   : > { %p1080_p10 = pnand %p1078_p9, %p1066_p13  ;;  %p1087_p4 = por %p1086_p6, %p1085_p2 }
  0x22   : > { %p1081_p1 = pneg %p1080_p10 }
  0x24   : > { %p1088_p8 = pnand %p1087_p4, %p1081_p1 }
  0x26   : > { %1091 = shalt.err (!%p1088_p8)
}
  0x27   : > { %s1195_s8 = smov 64   ;;  %s1196_s9 = smov 4  }
  0x28   : > { %982 = dma.hbm_to_vmem [thread:$0]  (!%p1274_p11), %s1583_s1, 3072, %s1267_s22, [#allocation7], %s1195_s8, %s1195_s8, %s1196_s9  }
  0x29   : > { %p25_p1 = scmp.eq.s32.totalorder %s24_s26, 0  ;;  %p34_p2 = scmp.ne.s32.totalorder %s1188_s14, %s1184_s13 }
  0x2a   : > { %p35_p4 = scmp.eq.s32.totalorder %s1192_s15, 0  ;;  %p992_p6 = scmp.lt.s32.totalorder %s1192_s15, 2 }
  0x2b   : > { %s1313_s17 = scalar_select %p25_p1, %s1188_s14, %s27_s25  }
  0x2c   : > { %p36_p8 = por %p35_p4, %p34_p2  ;;  %p1593_p10 = scmp.eq.s32.totalorder %s1244_s16, 1 }
  0x2d   : > { %s148_s23 = sand.u32 1, %s1188_s14   ;;  %s860_s27 = sshll.u32 %s1192_s15, 7 }
  0x2e   : > { %p1317_p12 = por %p1593_p10, %p34_p2  ;;  %s820_s28 = sshll.u32 %s148_s23, 3 }
  0x2f   : > { %s1326_s4 = scalar_lea.hbm %s1582_s0, %s860_s27  ;;  %s152_s22 = scalar_lea.vmem [#allocation3], %s820_s28 }
  0x30   : > { %s159_s25 = sshll.u32 %s152_s22, 4  ;;  %p1328_p11 = pnand %p992_p6, %p36_p8  ;;  %s1332_s25 = int_to_ptr.vmem [resolvable:$true] %s159_s25 }
  0x31   : > { %s1334_s5 = scalar_lea.sflag [#allocation4], %s148_s23  ;;  %s1092_s6 = scalar_lea.hbm %s1326_s4, 128 }
  0x32   : > { %p1093_p13 = scmp.ne.s32.totalorder %s1326_s4, %s1092_s6  ;;  %p1094_p0 = pneg %p1328_p11 }
  0x33   : > { %s1097_s11 = scalar_lea.hbm %s1582_s0, 256  ;;  %p1098_p7 = scmp.lt.u32.totalorder %s1326_s4, %s1582_s0 }
  0x34   : > { %p1095_p3 = pnand %p1094_p0, %p1093_p13  ;;  %p1099_p9 = scmp.lt.u32.totalorder %s1097_s11, %s1092_s6 }
  0x35   : > { %p1101_p2 = scmp.lt.u32.totalorder %s1092_s6, %s1326_s4 }
  0x36   : > { %p1096_p5 = pneg %p1095_p3  ;;  %p1100_p1 = por %p1099_p9, %p1098_p7 }
  0x38   : > { %p1102_p4 = por %p1101_p2, %p1100_p1 }
  0x3a   : > { %p1103_p6 = pnand %p1102_p4, %p1096_p5 }
  0x3c   : > { %1106 = shalt.err (!%p1103_p6)
}
  0x3d   : > { %s1107_s23 = scalar_lea.vmem %s1332_s25, 128  ;;  %s1197_s29 = smov [#allocation3]  }
  0x3e   : > { %p1108_p8 = scmp.ne.s32.totalorder %s1332_s25, %s1107_s23  ;;  %s1112_s30 = sshll.u32 %s1197_s29, 4  ;;  %s1113_s30 = int_to_ptr.vmem [resolvable:$false] %s1112_s30 }
  0x3f   : > { %s1114_s22 = scalar_lea.vmem %s1113_s30, 256  ;;  %p1115_p3 = scmp.lt.s32.totalorder %s1332_s25, %s1113_s30 }
  0x40   : > { %p1110_p10 = pnand %p1108_p8, %p1094_p0  ;;  %p1116_p7 = scmp.lt.s32.totalorder %s1114_s22, %s1107_s23 }
  0x42   : > { %p1111_p13 = pneg %p1110_p10  ;;  %p1117_p9 = por %p1116_p7, %p1115_p3 }
  0x44   : > { %p1118_p1 = pnand %p1117_p9, %p1111_p13 }
  0x46   : > { %1121 = shalt.err (!%p1118_p1)
}
  0x47   : > { %986 = dma.hbm_to_vmem [thread:$0]  (!%p1328_p11), %s1326_s4, 128, %s1332_s25, %s1334_s5, %s1195_s8, %s1195_s8, %s1196_s9  }
  0x48   : > { %p1596_p0 = scmp.ne.s32.totalorder %s1591_s20, 0 }
  0x49   : > { %s1368_s6 = sand.u32 (!%p1596_p0), 1, %s1184_s13   ;;  %p1597_p5 = scmp.ne.s32.totalorder (!%p1596_p0), %s1589_s18, 0 }
  0x4a   : > { %171 = sbr.rel (%p1596_p0) target bundleno = 606 (0x25e), region = 32  ;;  %s824_s7 = sshll.u32 (!%p1596_p0), %s1368_s6, 3 }
  0x4b   : > { %s174_s10 = scalar_lea.sflag (!%p1596_p0), [#allocation4], %s1368_s6  ;;  %s1372_s11 = scalar_lea.vmem (!%p1596_p0), [#allocation3], %s824_s7 }
  0x51   : > { %1167 = dma.done.wait (%p1597_p5), %s174_s10, 128  }
  0x52   : > { %1169 = vsyncadd (%p1597_p5), %s174_s10, 4294967168  ;;  %p1598_p11 = scmp.eq.s32.totalorder %s1244_s16, 0 }
  0x54   : > { %1171 = dma.done.wait (%p1598_p11), [#allocation7], 3072   ;;  %p1599_p2 = pmov %p1598_p11 }
  0x55   : > { %v1198_v0 = vmov 0.0   ;;  %vm1199_vm0 = vmmov 0   ;;  %v1384_v1 = vld [vmem:[#allocation6 + $0x40] sm:$0xff]   ;;  %v1392_v4 = vld [vmem:[#allocation6 + $0x48] sm:$0xff]   ;;  %v1401_v7 = vld [vmem:[#allocation6 + $0x50] sm:$0xff]   ;;  %v254_v10 = vlaneseq  ;;  %s826_s8 = sshll.u32 %s1368_s6, 4 }
  0x56   : > { %1173 = vsyncadd (%p1599_p2), [#allocation7], 4294964224  ;;  %931 = vmatprep.subr.bf16.mxu1 %v1198_v0  ;;  %947 = vmatprep.mubr.msk.bf16.mxu1 %vm1199_vm0, %v1198_v0  ;;  %v1386_v2 = vld [vmem:[#allocation6] sm:$0xff]   ;;  %v1395_v5 = vld [vmem:[#allocation6 + $0x8] sm:$0xff]   ;;  %s861_s9 = sshll.u32 %s1244_s16, 8  ;;  %s203_s4 = scalar_lea.vmem [#allocation8], %s826_s8 }
  0x57   : > { %862 = vmatprep.subr.bf16.mxu0 %v1384_v1  ;;  %v1389_v3 = vld [vmem:[#allocation6 + $0x80] sm:$0xff]   ;;  %v1399_v6 = vld [vmem:[#allocation6 + $0x88] sm:$0xff]   ;;  %v1404_v8 = vld [vmem:[#allocation6 + $0x10] sm:$0xff]   ;;  %v1422_v15 = vshrl.u32 %v254_v10, 7  ;;  %s733_s25 = sshll.u32 %s203_s4, 4  ;;  %s1536_s27 = scalar_lea.hbm %s1585_s3, %s861_s9  ;;  %s1538_s25 = int_to_ptr.vmem [resolvable:$true] %s733_s25 }
  0x58   : > { %863 = vmatpush3.bf16.msra.mxu0 %v1386_v2  ;;  %932 = vmatpush3.bf16.msra.mxu1 %v1389_v3  ;;  %v1408_v9 = vld [vmem:[#allocation6 + $0x90] sm:$0xff]   ;;  %v1411_v11 = vld [vmem:[#allocation6 + $0x58] sm:$0xff]   ;;  %v1420_v14 = vld [vmem:[#allocation6 + $0x60] sm:$0xff]   ;;  %s720_s28 = scalar_lea.sflag [#allocation5], %s1368_s6  ;;  %s1122_s16 = scalar_lea.vmem %s1538_s25, 256 }
  0x59   : > { %864 = vmatprep.subr.bf16.mxu0 %v1392_v4  ;;  %933 = vmatprep.subr.bf16.mxu1 %v1198_v0  ;;  %v1413_v12 = vld [vmem:[#allocation6 + $0x18] sm:$0xff]   ;;  %v1425_v16 = vld [vmem:[#allocation6 + $0x20] sm:$0xff]   ;;  %v1432_v18 = vld [vmem:[#allocation6 + $0x68] sm:$0xff]   ;;  %v256_v19 = vadd.s32 8, %v1422_v15  ;;  %v261_v21 = vand.u32 15, %v1422_v15  ;;  %vm299_vm3 = vcmp.lt.s32.totalorder %v1422_v15, 1  ;;  %p1123_p4 = scmp.ne.s32.totalorder %s1538_s25, %s1122_s16 }
  0x5a   : > { %v1416_v13 = vld [vmem:[#allocation6 + $0x98] sm:$0xff]   ;;  %v1428_v17 = vld [vmem:[#allocation6 + $0xa0] sm:$0xff]   ;;  %v1436_v20 = vld [vmem:[#allocation6 + $0x28] sm:$0xff]   ;;  %vm306_vm4 = vcmp.lt.s32.totalorder %v1422_v15, 7  ;;  %s1200_s23 = smov [#allocation8]  }
  0x5b   : > { %v1440_v22 = vld [vmem:[#allocation6 + $0xa8] sm:$0xff]   ;;  %v1444_v23 = vld [vmem:[#allocation6 + $0x70] sm:$0xff]   ;;  %v268_v24 = vand.u32 15, %v256_v19  ;;  %vm281_vm1 = vcmp.ne.s32.totalorder %v261_v21, 0  ;;  %v1055_v28 = vld [vmem:[#allocation6 + $0x78] sm:$0xff]   ;;  %p1124_p6 = pnand %p1123_p4, %p1317_p12  ;;  %s1126_s29 = sshll.u32 %s1200_s23, 4  ;;  %s1127_s29 = int_to_ptr.vmem [resolvable:$false] %s1126_s29 }
  0x5c   : > { %865 = vmatpush3.bf16.msra.mxu0 %v1395_v5  ;;  %934 = vmatpush3.bf16.msra.mxu1 %v1399_v6  ;;  %v1447_v25 = vld [vmem:[#allocation6 + $0x30] sm:$0xff]   ;;  %v1455_v31 = vsel %vm281_vm1, 1.0, %v1198_v0  ;;  %v1056_v36 = vld [vmem:[#allocation6 + $0x38] sm:$0xff]   ;;  %s1128_s30 = scalar_lea.vmem %s1127_s29, 512  ;;  %p1129_p10 = scmp.lt.s32.totalorder %s1538_s25, %s1127_s29 }
  0x5d   : > { %866 = vmatprep.subr.bf16.mxu0 %v1401_v7  ;;  %935 = vmatprep.subr.bf16.mxu1 %v1198_v0  ;;  %v293_v26 = vld [vmem:[%s1372_s11] sm:$0xff]   ;;  %vm288_vm2 = vcmp.ne.s32.totalorder %v268_v24, 15  ;;  %p1125_p8 = pneg %p1124_p6  ;;  %p1130_p13 = scmp.lt.s32.totalorder %s1128_s30, %s1122_s16 }
  0x5e   : > { %v1054_v27 = vld [vmem:[#allocation6 + $0xb0] sm:$0xff]   ;;  %v295_v29 = vunpack.c.l.bf16 %v293_v26  ;;  %v296_v30 = vunpack.c.h.bf16 %v293_v26  ;;  %507 = vmatprep.mubr.bf16.mxu0 %v293_v26  ;;  %v1461_v37 = vsel %vm288_vm2, 1.0, %v1198_v0  ;;  %v1058_v38 = vld [vmem:[#allocation6 + $0xb8] sm:$0xff]  }
  0x5f   : > { %v1503_v49 = vld [vmem:[%s1584_s2] ss:$0 sm:$0xff]  ;;  %p1131_p3 = por %p1130_p13, %p1129_p10 }
  0x60   : > { %867 = vmatpush3.bf16.msra.mxu0 %v1404_v8  ;;  %936 = vmatpush3.bf16.msra.mxu1 %v1408_v9  ;;  %v297_v32 = vrot.slane %v295_v29, 7  ;;  %v298_v33 = vrot.slane %v296_v30, 7  ;;  %v304_v34 = vrot.slane %v295_v29, 1  ;;  %v305_v35 = vrot.slane %v296_v30, 1 }
  0x61   : > { %868 = vmatprep.subr.bf16.mxu0 %v1411_v11  ;;  %937 = vmatprep.subr.bf16.mxu1 %v1198_v0  ;;  %p1132_p7 = pnand %p1131_p3, %p1125_p8 }
  0x62   : > { %v300_v39 = vsel %vm299_vm3, %v297_v32, %v298_v33  ;;  %v301_v40 = vsel %vm299_vm3, %v298_v33, %v297_v32  ;;  %v307_v42 = vsel %vm306_vm4, %v304_v34, %v305_v35  ;;  %v308_v43 = vsel %vm306_vm4, %v305_v35, %v304_v34 }
  0x63   : > { %v302_v41 = vmul.f32 %v1455_v31, %v301_v40  ;;  %v310_v44 = vmul.f32 %v1461_v37, %v308_v43 }
  0x64   : > { %869 = vmatpush3.bf16.msra.mxu0 %v1413_v12  ;;  %938 = vmatpush3.bf16.msra.mxu1 %v1416_v13 }
  0x65   : > { %870 = vmatprep.subr.bf16.mxu0 %v1420_v14  ;;  %939 = vmatprep.subr.bf16.mxu1 %v1198_v0  ;;  %v311_v45 = vpack.c.bf16 %v300_v39, %v302_v41  ;;  %v320_v46 = vpack.c.bf16 %v310_v44, %v307_v42 }
  0x68   : > { %871 = vmatpush3.bf16.msra.mxu0 %v1425_v16  ;;  %940 = vmatpush3.bf16.msra.mxu1 %v1428_v17 }
  0x69   : > { %872 = vmatprep.subr.bf16.mxu0 %v1432_v18  ;;  %941 = vmatprep.subr.bf16.mxu1 %v1198_v0 }
  0x6c   : > { %873 = vmatpush3.bf16.msra.mxu0 %v1436_v20  ;;  %942 = vmatpush3.bf16.msra.mxu1 %v1440_v22 }
  0x6d   : > { %874 = vmatprep.subr.bf16.mxu0 %v1444_v23  ;;  %943 = vmatprep.subr.bf16.mxu1 %v1198_v0 }
  0x70   : > { %875 = vmatpush3.bf16.msra.mxu0 %v1447_v25  ;;  %944 = vmatpush3.bf16.msra.mxu1 %v1054_v27 }
  0x71   : > { %876 = vmatprep.subr.bf16.mxu0 %v1055_v28  ;;  %945 = vmatprep.subr.bf16.mxu1 %v1198_v0 }
  0x74   : > { %877 = vmatpush3.bf16.msra.mxu0 %v1056_v36  ;;  %946 = vmatpush3.bf16.msra.mxu1 %v1058_v38 }
  0x75   : > { %893 = vmatprep.subr.bf16.mxu0 %v1384_v1  ;;  %951 = vmatprep.subr.bf16.mxu1 %v1389_v3 }
  0x77   : > { %508 = vmatmul.mubr.bf16.vlgmr.msra.gmra.mrb[0].mxu0 %v311_v45  ;;  %948 = vmatmul.mubr.bf16.vlgmr.msra.gmra.mrb[0].mxu1 %v320_v46 }
  0x78   : > { %894 = vmatpush3.bf16.msra.mxu0 %v1386_v2  ;;  %952 = vmatpush3.bf16.msra.mxu1 %v1389_v3 }
  0x79   : > { %895 = vmatprep.subr.bf16.mxu0 %v1392_v4  ;;  %953 = vmatprep.subr.bf16.mxu1 %v1399_v6 }
  0x7c   : > { %896 = vmatpush3.bf16.msra.mxu0 %v1395_v5  ;;  %954 = vmatpush3.bf16.msra.mxu1 %v1399_v6 }
  0x7d   : > { %897 = vmatprep.subr.bf16.mxu0 %v1401_v7  ;;  %955 = vmatprep.subr.bf16.mxu1 %v1408_v9 }
  0x80   : > { %898 = vmatpush3.bf16.msra.mxu0 %v1404_v8  ;;  %956 = vmatpush3.bf16.msra.mxu1 %v1408_v9 }
  0x81   : > { %899 = vmatprep.subr.bf16.mxu0 %v1411_v11  ;;  %957 = vmatprep.subr.bf16.mxu1 %v1416_v13 }
  0x84   : > { %900 = vmatpush3.bf16.msra.mxu0 %v1413_v12  ;;  %958 = vmatpush3.bf16.msra.mxu1 %v1416_v13 }
  0x85   : > { %901 = vmatprep.subr.bf16.mxu0 %v1420_v14  ;;  %959 = vmatprep.subr.bf16.mxu1 %v1428_v17 }
  0x88   : > { %902 = vmatpush3.bf16.msra.mxu0 %v1425_v16  ;;  %960 = vmatpush3.bf16.msra.mxu1 %v1428_v17 }
  0x89   : > { %903 = vmatprep.subr.bf16.mxu0 %v1432_v18  ;;  %961 = vmatprep.subr.bf16.mxu1 %v1440_v22 }
  0x8c   : > { %904 = vmatpush3.bf16.msra.mxu0 %v1436_v20  ;;  %962 = vmatpush3.bf16.msra.mxu1 %v1440_v22 }
  0x8d   : > { %905 = vmatprep.subr.bf16.mxu0 %v1444_v23  ;;  %963 = vmatprep.subr.bf16.mxu1 %v1054_v27 }
  0x90   : > { %906 = vmatpush3.bf16.msra.mxu0 %v1447_v25  ;;  %964 = vmatpush3.bf16.msra.mxu1 %v1054_v27 }
  0x91   : > { %907 = vmatprep.subr.bf16.mxu0 %v1055_v28  ;;  %965 = vmatprep.subr.bf16.mxu1 %v1058_v38 }
  0x94   : > { %908 = vmatpush3.bf16.msra.mxu0 %v1056_v36  ;;  %966 = vmatpush3.bf16.msra.mxu1 %v1058_v38 }
 0x14a   : > { %v878_v47 = vpop.f32.mrb[0].mxu0  ;;  %v550_v50 = vpop.f32.mrb[0].mxu1 }
 0x14b   : > { %v879_v48 = vpop.f32.mrb[1].mxu0  ;;  %v949_v53 = vpop.f32.mrb[1].mxu1 }
 0x14c   : > { %v880_v51 = vadd.f32 %v879_v48, %v878_v47  ;;  %v881_v52 = vpop.f32.mrb[2].mxu0  ;;  %v553_v55 = vpop.f32.mrb[2].mxu1 }
 0x14d   : > { %v882_v54 = vpop.f32.mrb[3].mxu0  ;;  %v950_v58 = vpop.f32.mrb[3].mxu1 }
 0x14e   : > { %v510_v56 = vadd.f32 %v880_v51, %v1503_v49  ;;  %v883_v57 = vadd.f32 %v882_v54, %v881_v52 }
 0x150   : > { %v551_v59 = vadd.f32 %v550_v50, %v510_v56  ;;  %v513_v60 = vadd.f32 %v883_v57, %v1503_v49 }
 0x152   : > { %v554_v61 = vadd.f32 %v553_v55, %v513_v60  ;;  %v567_v62 = vrot.slane %v551_v59, 7  ;;  %v561_v63 = vmul.f32 0.044715, %v551_v59  ;;  %v573_v2 = vrot.slane %v551_v59, 1 }
 0x153   : > { %v559_v4 = vmul.f32 0.70710677, %v551_v59  ;;  %v557_v44 = vmul.f32 0.5, %v551_v59 }
 0x154   : > { %v581_v0 = vpack.c.bf16 %v554_v61, %v551_v59  ;;  %v568_v1 = vrot.slane %v554_v61, 7  ;;  %v574_v3 = vrot.slane %v554_v61, 1  ;;  %v560_v5 = vmul.f32 0.70710677, %v554_v61 }
 0x155   : > { %v562_v6 = vmul.f32 0.044715, %v554_v61  ;;  %v563_v7 = vmul.f32 %v561_v63, %v551_v59  ;;  %v558_v52 = vmul.f32 0.5, %v554_v61 }
 0x156   : > { %641 = vmatprep.mubr.bf16.mxu0 %v581_v0  ;;  %v569_v8 = vsel %vm299_vm3, %v567_v62, %v568_v1  ;;  %v570_v9 = vsel %vm299_vm3, %v568_v1, %v567_v62  ;;  %v575_v10 = vsel %vm306_vm4, %v573_v2, %v574_v3  ;;  %v576_v11 = vsel %vm306_vm4, %v574_v3, %v573_v2 }
 0x157   : > { %v571_v12 = vmul.f32 %v1455_v31, %v570_v9  ;;  %v578_v13 = vmul.f32 %v1461_v37, %v576_v11  ;;  %v564_v14 = vmul.f32 %v562_v6, %v554_v61  ;;  %v565_v16 = vmul.f32 %v563_v7, %v559_v4 }
 0x159   : > { %v579_v17 = vpack.c.bf16 %v569_v8, %v571_v12  ;;  %v583_v18 = vpack.c.bf16 %v578_v13, %v575_v10  ;;  %v566_v19 = vmul.f32 %v564_v14, %v560_v5  ;;  %v591_v20 = vrot.slane %v565_v16, 1 }
 0x15a   : > { %v585_v23 = vrot.slane %v565_v16, 7 }
 0x15b   : > { %642 = vmatmul.mubr.bf16.vlgmr.msra.gmra.mrb[4].mxu0 %v579_v17  ;;  %967 = vmatprep.mubr.bf16.mxu1 %v583_v18  ;;  %v599_v21 = vpack.c.bf16 %v566_v19, %v565_v16  ;;  %v592_v22 = vrot.slane %v566_v19, 1  ;;  %v586_v24 = vrot.slane %v566_v19, 7 }
 0x15d   : > { %649 = vmatprep.mubr.bf16.mxu0 %v599_v21  ;;  %v593_v25 = vsel %vm306_vm4, %v591_v20, %v592_v22  ;;  %v594_v26 = vsel %vm306_vm4, %v592_v22, %v591_v20  ;;  %v587_v27 = vsel %vm299_vm3, %v585_v23, %v586_v24  ;;  %v588_v28 = vsel %vm299_vm3, %v586_v24, %v585_v23 }
 0x15e   : > { %v596_v29 = vmul.f32 %v1461_v37, %v594_v26  ;;  %v589_v30 = vmul.f32 %v1455_v31, %v588_v28 }
 0x160   : > { %v601_v32 = vpack.c.bf16 %v596_v29, %v593_v25  ;;  %v597_v33 = vpack.c.bf16 %v587_v27, %v589_v30 }
 0x162   : > { %968 = vmatmul.mubr.bf16.vlgmr.msra.gmra.mrb[4].mxu1 %v601_v32 }
 0x163   : > { %650 = vmatmul.mubr.bf16.gmra.mrb[8].mxu0 %v597_v33 }
 0x22e   : > { %v909_v34 = vpop.f32.mrb[4].mxu0 }
 0x22f   : > { %v910_v35 = vpop.f32.mrb[5].mxu0 }
 0x230   : > { %v911_v36 = vadd.f32 %v910_v35, %v909_v34  ;;  %v912_v38 = vpop.f32.mrb[6].mxu0 }
 0x231   : > { %v913_v39 = vpop.f32.mrb[7].mxu0 }
 0x232   : > { %v914_v40 = vadd.f32 %v913_v39, %v912_v38  ;;  %v644_v42 = vadd.f32 %v911_v36, %v1503_v49 }
 0x234   : > { %v647_v31 = vadd.f32 %v914_v40, %v1503_v49 }
 0x235   : > { %v969_v41 = vpop.f32.mrb[4].mxu1 }
 0x236   : > { %v692_v43 = vpop.f32.mrb[5].mxu1  ;;  %v915_v15 = vpop.f32.mrb[8].mxu0 }
 0x237   : > { %v693_v45 = vadd.f32 %v692_v43, %v644_v42  ;;  %v970_v37 = vpop.f32.mrb[6].mxu1  ;;  %v916_v46 = vpop.f32.mrb[9].mxu0 }
 0x238   : > { %v917_v47 = vadd.f32 %v916_v46, %v915_v15  ;;  %v695_v48 = vpop.f32.mrb[7].mxu1  ;;  %v918_v50 = vpop.f32.mrb[10].mxu0 }
 0x239   : > { %v707_v51 = vadd.f32 %v693_v45, %v557_v44  ;;  %v696_v53 = vadd.f32 %v695_v48, %v647_v31  ;;  %v919_v54 = vpop.f32.mrb[11].mxu0 }
 0x23a   : > { %v652_v55 = vadd.f32 %v917_v47, %v1503_v49  ;;  %v920_v56 = vadd.f32 %v919_v54, %v918_v50 }
 0x23b   : > { %v708_v57 = vadd.f32 %v696_v53, %v558_v52  ;;  %v709_v58 = vmax.f32 %v707_v51, 0.0 }
 0x23c   : > { %v701_v59 = vadd.f32 %v969_v41, %v652_v55  ;;  %v655_v60 = vadd.f32 %v920_v56, %v1503_v49 }
 0x23d   : > { %v710_v63 = vmax.f32 %v708_v57, 0.0 }
 0x23e   : > { %v711_v62 = vadd.f32 %v709_v58, %v701_v59  ;;  %v704_v0 = vadd.f32 %v970_v37, %v655_v60 }
 0x240   : > { %1060 = vtanh.f32 %v711_v62  ;;  %v712_v1 = vadd.f32 %v710_v63, %v704_v0 }
 0x242   : > { %1062 = vtanh.f32 %v712_v1 }
 0x24a   : > { %v1061_v61 = vpop.eup %1060 }
 0x24b   : > { %v715_v2 = vmul.f32 %v1061_v61, %v557_v44 }
 0x24c   : > { %v1063_v3 = vpop.eup %1062 }
 0x24d   : > { %v716_v49 = vmul.f32 %v1063_v3, %v558_v52  ;;  %717 = vst [vmem:[%s203_s4] sm:$0xff] %v715_v2 }
 0x24f   : > { %718 = vst [vmem:[%s203_s4 + $0x8] sm:$0xff] %v716_v49 }
 0x250   : > { %1135 = shalt.err (!%p1132_p7)
}
 0x251   : > { %s1136_s22 = scalar_lea.hbm %s1536_s27, 256  ;;  %s1140_s11 = scalar_lea.hbm %s1585_s3, 512 }
 0x252   : > { %p1137_p9 = scmp.ne.s32.totalorder %s1536_s27, %s1136_s22  ;;  %p1141_p5 = scmp.lt.u32.totalorder %s1536_s27, %s1585_s3 }
 0x253   : > { %p1142_p11 = scmp.lt.u32.totalorder %s1140_s11, %s1136_s22  ;;  %p1144_p4 = scmp.lt.u32.totalorder %s1136_s22, %s1536_s27 }
 0x254   : > { %p1138_p1 = pnand %p1137_p9, %p1317_p12 }
 0x255   : > { %p1143_p2 = por %p1142_p11, %p1141_p5 }
 0x256   : > { %p1139_p0 = pneg %p1138_p1 }
 0x257   : > { %p1145_p6 = por %p1144_p4, %p1143_p2 }
 0x259   : > { %p1146_p8 = pnand %p1145_p6, %p1139_p0 }
 0x25b   : > { %1149 = shalt.err (!%p1146_p8)
}
 0x25c   : > { %s1201_s8 = smov 128   ;;  %s1202_s9 = smov 8  }
 0x25d   : > { %977 = dma.vmem_to_hbm [thread:$0]  (%p1317_p12), %s1538_s25, 256, %s1536_s27, %s720_s28, %s1201_s8, %s1201_s8, %s1202_s9  }
 0x25e PF: > { %s748_s4 = sand.u32 1, %s1180_s12   ;;  %p1600_p10 = scmp.ne.s32.totalorder %s1590_s19, 0 }
 0x25f   : > { %p1601_p13 = scmp.ge.s32.totalorder %s1192_s15, 2  ;;  %s749_s26 = scalar_lea.sflag [#allocation5], %s748_s4 }
 0x261   : > { %p988_p3 = pnand %p1601_p13, %p1600_p10 }
 0x263   : > { %1175 = dma.done.wait (!%p988_p3), %s749_s26, 256  }
 0x264   : > { %1177 = vsyncadd (!%p988_p3), %s749_s26, 4294967040  ;;  %p17_p7 = scmp.ge.s32.totalorder %s1279_s24, 4   ;;  %s1602_s12 = smov %s1184_s13 }
 0x265   : > { %s1603_s13 = smov %s1188_s14  ;;  %s1604_s14 = smov %s1313_s17 }
 0x266   : > { %s1605_s15 = smov %s1279_s24  ;;  %19 = sbr.rel (!%p17_p7) target bundleno = 6 (0x6), region = 81 }
 0x26d   :  { %754 = vsyncpa [#allocation4], 1 }
 0x26e   :  { %756 = vsyncpa [#allocation4 + $0x1], 1 }
 0x26f   :  { %757 = vsyncpa [#allocation7], 1 }
 0x270   :  { %758 = vsyncpa [#allocation5], 1 }
 0x271   :  { %760 = vsyncpa [#allocation5 + $0x1], 1 }

</bundles_post_ra>
